<compile_context>
chip_gen: v7x
topology: tpu7x:2x2x1
jax: 0.10.0
libtpu: 0.0.40
codegen_flags: <defaults>
</compile_context>

<pallas_src>
from functools import partial

import jax
import jax.numpy as jnp
from jax.experimental import pallas as pl
from jax.experimental.pallas import tpu as pltpu


# ----------------------------------------------------------------------------- kernel
def dino_loss_kernel(s_ref, t_ref, center_ref, ce_out_ref, tsum_out_ref,
                     ce_acc_ref, tsum_acc_ref, *,
                     n_crops_s, n_crops_t, temp_s, temp_t):
    i = pl.program_id(1)                 # batch-reduction axis (last, "arbitrary")
    n_inner = pl.num_programs(1)

    @pl.when(i == 0)
    def _init():
        ce_acc_ref[...] = jnp.zeros_like(ce_acc_ref)
        tsum_acc_ref[...] = jnp.zeros_like(tsum_acc_ref)

    c = center_ref[...].astype(jnp.float32)            # (1, D)
    inv_ts = jnp.float32(1.0 / temp_s)                  # folded at trace time
    inv_tt = jnp.float32(1.0 / temp_t)
    k = min(n_crops_s, n_crops_t)                       # skipped diagonal pairs

    sum_q = None        # sum over teacher crops of softmax probs          (tn, D)
    sum_ss = None       # sum over student crops of scaled logits          (tn, D)
    sum_shift = None    # sum over student crops of (row max + logsumexp)  (tn, 1)
    diag = None         # sum over skipped diagonal pairs of q * logp      (tn, D)

    # Static (trace-time) loop over crops: keeps only a few (tn, D) f32
    # temporaries live instead of full (S,tn,D)/(T,tn,D) softmax stacks.
    for idx in range(max(n_crops_s, n_crops_t)):
        logp_idx = None
        if idx < n_crops_s:
            ss = s_ref[idx].astype(jnp.float32) * inv_ts          # (tn, D)
            m = jnp.max(ss, axis=-1, keepdims=True)
            sh = ss - m
            lse = jnp.log(jnp.sum(jnp.exp(sh), axis=-1, keepdims=True))
            sum_ss = ss if sum_ss is None else sum_ss + ss
            shift = m + lse                                        # (tn, 1)
            sum_shift = shift if sum_shift is None else sum_shift + shift
            if idx < k:
                logp_idx = sh - lse                                # log_softmax crop idx
        if idx < n_crops_t:
            traw = t_ref[idx].astype(jnp.float32)                  # raw teacher (tn, D)
            tt = (traw - c) * inv_tt
            tt = tt - jnp.max(tt, axis=-1, keepdims=True)
            te = jnp.exp(tt)
            q = te * pl.reciprocal(jnp.sum(te, axis=-1, keepdims=True),
                                   approx=False)                   # softmax (tn, D)
            sum_q = q if sum_q is None else sum_q + q
            if idx < k:
                d = q * logp_idx
                diag = d if diag is None else diag + d
            if idx < 2:
                # Center EMA uses RAW teacher logits of crops 0 and 1 only
                # (matches torch.cat((teacher_output[0], teacher_output[1]))).
                tsum_acc_ref[...] += jnp.sum(traw, axis=0, keepdims=True)

    # All (iq, v != iq) pairs factorize elementwise:
    #   sum_{iq,v} q_iq * logp_v = (sum q) * (sum logp); subtract skipped diagonal.
    sum_logp = sum_ss - sum_shift                                   # broadcast subtract
    ce_acc_ref[...] += jnp.sum(sum_q * sum_logp - diag, axis=0, keepdims=True)

    @pl.when(i == n_inner - 1)
    def _finalize():
        ce_out_ref[0] = ce_acc_ref[...]         # per-chunk (1, D) partial CE sum
        tsum_out_ref[0] = tsum_acc_ref[...]     # per-chunk (1, D) teacher[0]+[1] sum


# ----------------------------------------------------------------------------- helpers
def _query_vmem_bytes(default=64 * 1024 * 1024):
    """Per-core VMEM capacity; conservative (v7x-sized) fallback."""
    try:
        info = pltpu.get_tpu_info()
        v = getattr(info, "vmem_capacity_bytes", None)
        if v:
            return int(v)
    except Exception:
        pass
    return default


def _query_num_cores(default=1):
    """TensorCores per chip (2 on v7x, 1 on v5e/v6e); safe fallback of 1."""
    try:
        info = pltpu.get_tpu_info()
        for name in ("num_tensorcores", "tensorcores_per_chip", "num_cores",
                     "core_count"):
            v = getattr(info, name, None)
            if isinstance(v, int) and v > 0:
                return v
    except Exception:
        pass
    try:
        v = getattr(jax.devices()[0], "num_cores", None)
        if isinstance(v, int) and v > 0:
            return v
    except Exception:
        pass
    return default


def _pick_tile_n(n, d, n_crops_total, in_bytes, vmem_bytes, sublane):
    """Largest sublane-aligned batch tile that divides n and fits VMEM.

    Per-step need ~ double-buffered input tiles (student + teacher) plus a
    handful of f32 (tn, D) live temporaries; accumulators are only (1, D).
    """
    budget = int(0.55 * vmem_bytes)
    candidates = [t for t in (2048, 1024, 512, 256, 128, 64, 32, 16, 8)
                  if t % sublane == 0 and t <= n and n % t == 0]
    for t in candidates:
        need = 2 * n_crops_total * t * d * in_bytes + 6 * t * d * 4
        if need <= budget:
            return t
    if candidates:
        return candidates[-1]      # smallest aligned divisor; may still be tight
    return n                       # full-extent block (always a legal block shape)


# ----------------------------------------------------------------------------- wrapper
def dino_loss(student, teacher, center, *, temp_s=0.1, temp_t=0.04, momentum=0.9,
              tile_n=None, num_chunks=None):
    """Returns (total_loss, new_center) matching DINOLoss.forward + update_center."""
    S, N, D = student.shape
    T, N2, D2 = teacher.shape
    assert (N2, D2) == (N, D)
    assert T >= 2, "update_center concatenates teacher_output[0] and teacher_output[1]"
    assert center.shape == (1, D)

    k = min(S, T)
    n_terms = S * T - k
    assert n_terms > 0

    in_bytes = max(student.dtype.itemsize, teacher.dtype.itemsize)
    sublane = 16 if in_bytes == 2 else 8
    vmem_bytes = _query_vmem_bytes()

    tn = tile_n if tile_n is not None else _pick_tile_n(N, D, S + T, in_bytes,
                                                        vmem_bytes, sublane)
    assert N % tn == 0 and (tn == N or tn % 8 == 0)

    total_steps = N // tn
    chunks = num_chunks if num_chunks is not None else _query_num_cores()
    chunks = max(1, min(int(chunks), total_steps))
    while total_steps % chunks != 0:
        chunks -= 1
    steps_inner = total_steps // chunks

    vmem_limit = min(int(vmem_bytes * 0.9), 100 * 1024 * 1024)

    kernel = partial(dino_loss_kernel,
                     n_crops_s=S, n_crops_t=T,
                     temp_s=float(temp_s), temp_t=float(temp_t))

    cost = pl.CostEstimate(
        flops=int(12 * (S + T) * N * D),
        transcendentals=int((S + T) * N * D),
        bytes_accessed=int((S + T) * N * D * in_bytes + D * 4 + 2 * chunks * D * 4),
    )

    ce_partials, tsum_partials = pl.pallas_call(
        kernel,
        out_shape=(jax.ShapeDtypeStruct((chunks, 1, D), jnp.float32),   # CE partials
                   jax.ShapeDtypeStruct((chunks, 1, D), jnp.float32)),  # teacher sums
        grid_spec=pltpu.PrefetchScalarGridSpec(
            num_scalar_prefetch=0,
            grid=(chunks, steps_inner),
            in_specs=[
                pl.BlockSpec((S, tn, D), lambda c, i: (0, c * steps_inner + i, 0)),
                pl.BlockSpec((T, tn, D), lambda c, i: (0, c * steps_inner + i, 0)),
                pl.BlockSpec((1, D), lambda c, i: (0, 0)),              # resident center
            ],
            out_specs=(
                pl.BlockSpec((1, 1, D), lambda c, i: (c, 0, 0)),
                pl.BlockSpec((1, 1, D), lambda c, i: (c, 0, 0)),
            ),
            scratch_shapes=[
                pltpu.VMEM((1, D), jnp.float32),   # deferred cross-entropy partials
                pltpu.VMEM((1, D), jnp.float32),   # deferred teacher[0]+teacher[1] sum
            ],
        ),
        compiler_params=pltpu.CompilerParams(
            dimension_semantics=("parallel", "arbitrary"),   # chunk axis || , batch reduce
            vmem_limit_bytes=vmem_limit,
        ),
        cost_estimate=cost,
    )(student, teacher, center)

    # Trivial per-chunk combine + scaling + center EMA in the wrapper (cheap).
    total_loss = -jnp.sum(ce_partials) * jnp.float32(1.0 / (n_terms * N))
    batch_center = jnp.sum(tsum_partials, axis=0) * jnp.float32(1.0 / (2 * N))  # (1, D)
    new_center = (center.astype(jnp.float32) * jnp.float32(momentum)
                  + batch_center * jnp.float32(1.0 - momentum))
    return total_loss, new_center


# ----------------------------------------------------------------------------- reference
def reference_dino_loss(student, teacher, center, temp_s, temp_t, momentum):
    q = jax.nn.softmax((teacher - center) / temp_t, axis=-1)
    logp = jax.nn.log_softmax(student / temp_s, axis=-1)
    total = jnp.float32(0.0)
    n_terms = 0
    for iq in range(teacher.shape[0]):
        for v in range(student.shape[0]):
            if v == iq:
                continue
            loss = jnp.sum(-q[iq] * logp[v], axis=-1)
            total = total + loss.mean()
            n_terms += 1
    total = total / n_terms
    batch_center = jnp.concatenate([teacher[0], teacher[1]], axis=0).mean(
        axis=0, keepdims=True)
    new_center = center * momentum + batch_center * (1.0 - momentum)
    return total, new_center


# ----------------------------------------------------------------------------- main
if __name__ == "__main__":
    key = jax.random.PRNGKey(0)
    k_s, k_t, k_c = jax.random.split(key, 3)

    # Small shapes consistent with DINO: 4 student crops (2 global + 2 local),
    # 2 teacher (global) crops, 16 samples, 128-dim projection head output.
    S, T, N, D = 4, 2, 16, 128
    TEMP_S, TEMP_T, MOMENTUM = 0.1, 0.04, 0.9

    student = jax.random.normal(k_s, (S, N, D), dtype=jnp.float32)
    teacher = jax.random.normal(k_t, (T, N, D), dtype=jnp.float32)
    center = 0.1 * jax.random.normal(k_c, (1, D), dtype=jnp.float32)

    # tile_n=8, num_chunks=1 force a 2-step reduction grid so the init /
    # accumulate / finalize paths are all exercised.
    loss, new_center = dino_loss(student, teacher, center,
                                 temp_s=TEMP_S, temp_t=TEMP_T, momentum=MOMENTUM,
                                 tile_n=8, num_chunks=1)
    loss = jax.block_until_ready(loss)
    new_center = jax.block_until_ready(new_center)

    ref_loss, ref_center = reference_dino_loss(student, teacher, center,
                                               TEMP_S, TEMP_T, MOMENTUM)
    assert jnp.allclose(loss, ref_loss, rtol=2e-5, atol=2e-5), (loss, ref_loss)
    assert jnp.allclose(new_center, ref_center, rtol=2e-5, atol=1e-6), "center mismatch"

    print("KERNEL_OK")
</pallas_src>

<mosaic_0001>
module attributes {stable_mosaic.version = 11 : i64} {
  func.func @dino_loss_kernel(%arg0: i32, %arg1: i32, %arg2: memref<4x8x128xf32, #tpu.memory_space<vmem>>, %arg3: memref<2x8x128xf32, #tpu.memory_space<vmem>>, %arg4: memref<1x128xf32, #tpu.memory_space<vmem>>, %arg5: memref<1x1x128xf32, #tpu.memory_space<vmem>>, %arg6: memref<1x1x128xf32, #tpu.memory_space<vmem>>, %arg7: memref<1x128xf32, #tpu.memory_space<vmem>>, %arg8: memref<1x128xf32, #tpu.memory_space<vmem>>) attributes {dimension_semantics = [#tpu.dimension_semantics<parallel>, #tpu.dimension_semantics<arbitrary>], iteration_bounds = array<i64: 1, 2>, scalar_prefetch = 0 : i64, scratch_operands = 2 : i64, tpu.core_type = #tpu.core_type<tc>, window_params = [{transform_indices = @transform_0, window_bounds = array<i64: 4, 8, 128>}, {transform_indices = @transform_1, window_bounds = array<i64: 2, 8, 128>}, {pipeline_mode = #tpu.pipeline_mode<synchronous>, transform_indices = @transform_2, window_bounds = array<i64: 1, 128>}, {transform_indices = @transform_3, window_bounds = array<i64: 1, 1, 128>}, {transform_indices = @transform_4, window_bounds = array<i64: 1, 1, 128>}]} {
    %c0_i32 = arith.constant 0 : i32
    %0 = arith.cmpi eq, %arg1, %c0_i32 : i32
    %1 = arith.extui %0 : i1 to i32
    %c0_i32_0 = arith.constant 0 : i32
    %2 = arith.cmpi ne, %1, %c0_i32_0 : i32
    scf.if %2 {
      %cst_50 = arith.constant 0.000000e+00 : f32
      %124 = vector.broadcast %cst_50 : f32 to vector<1x128xf32>
      %c0_51 = arith.constant 0 : index
      %c0_52 = arith.constant 0 : index
      %125 = vector.load %arg7[%c0_51, %c0_52] : memref<1x128xf32, #tpu.memory_space<vmem>>, vector<1x128xf32>
      tpu.vector_store %arg7[%c0_51, %c0_52], %124 {strides = array<i32>} : memref<1x128xf32, #tpu.memory_space<vmem>>, vector<1x128xf32>,
      %cst_53 = arith.constant 0.000000e+00 : f32
      %126 = vector.broadcast %cst_53 : f32 to vector<1x128xf32>
      %c0_54 = arith.constant 0 : index
      %c0_55 = arith.constant 0 : index
      %127 = vector.load %arg8[%c0_54, %c0_55] : memref<1x128xf32, #tpu.memory_space<vmem>>, vector<1x128xf32>
      tpu.vector_store %arg8[%c0_54, %c0_55], %126 {strides = array<i32>} : memref<1x128xf32, #tpu.memory_space<vmem>>, vector<1x128xf32>,
    } else {
    }
    %c0 = arith.constant 0 : index
    %c0_1 = arith.constant 0 : index
    %3 = vector.load %arg4[%c0, %c0_1] : memref<1x128xf32, #tpu.memory_space<vmem>>, vector<1x128xf32>
    %c0_2 = arith.constant 0 : index
    %c0_3 = arith.constant 0 : index
    %c0_4 = arith.constant 0 : index
    %4 = vector.load %arg2[%c0_2, %c0_3, %c0_4] : memref<4x8x128xf32, #tpu.memory_space<vmem>>, vector<1x8x128xf32>
    %5 = vector.shape_cast %4 : vector<1x8x128xf32> to vector<8x128xf32>
    %cst = arith.constant 1.000000e+01 : f32
    %6 = vector.broadcast %cst : f32 to vector<8x128xf32>
    %7 = arith.mulf %5, %6 : vector<8x128xf32>
    %cst_5 = arith.constant dense<0xFF800000> : vector<8xf32>
    %8 = vector.multi_reduction <maximumf>, %7, %cst_5 [1] : vector<8x128xf32> to vector<8xf32>
    %9 = vector.shape_cast %8 : vector<8xf32> to vector<8x1xf32>
    %10 = vector.broadcast %9 : vector<8x1xf32> to vector<8x128xf32>
    %11 = arith.subf %7, %10 : vector<8x128xf32>
    %12 = math.exp %11 : vector<8x128xf32>
    %cst_6 = arith.constant dense<0.000000e+00> : vector<8xf32>
    %13 = vector.multi_reduction <add>, %12, %cst_6 [1] : vector<8x128xf32> to vector<8xf32>
    %14 = vector.shape_cast %13 : vector<8xf32> to vector<8x1xf32>
    %15 = math.log %14 : vector<8x1xf32>
    %16 = arith.addf %9, %15 : vector<8x1xf32>
    %17 = vector.broadcast %15 : vector<8x1xf32> to vector<8x128xf32>
    %18 = arith.subf %11, %17 : vector<8x128xf32>
    %c0_7 = arith.constant 0 : index
    %c0_8 = arith.constant 0 : index
    %c0_9 = arith.constant 0 : index
    %19 = vector.load %arg3[%c0_7, %c0_8, %c0_9] : memref<2x8x128xf32, #tpu.memory_space<vmem>>, vector<1x8x128xf32>
    %20 = vector.shape_cast %19 : vector<1x8x128xf32> to vector<8x128xf32>
    %21 = vector.broadcast %3 : vector<1x128xf32> to vector<8x128xf32>
    %22 = arith.subf %20, %21 : vector<8x128xf32>
    %cst_10 = arith.constant 2.500000e+01 : f32
    %23 = vector.broadcast %cst_10 : f32 to vector<8x128xf32>
    %24 = arith.mulf %22, %23 : vector<8x128xf32>
    %cst_11 = arith.constant dense<0xFF800000> : vector<8xf32>
    %25 = vector.multi_reduction <maximumf>, %24, %cst_11 [1] : vector<8x128xf32> to vector<8xf32>
    %26 = vector.shape_cast %25 : vector<8xf32> to vector<8x1xf32>
    %27 = vector.broadcast %26 : vector<8x1xf32> to vector<8x128xf32>
    %28 = arith.subf %24, %27 : vector<8x128xf32>
    %29 = math.exp %28 : vector<8x128xf32>
    %cst_12 = arith.constant dense<0.000000e+00> : vector<8xf32>
    %30 = vector.multi_reduction <add>, %29, %cst_12 [1] : vector<8x128xf32> to vector<8xf32>
    %31 = vector.shape_cast %30 : vector<8xf32> to vector<8x1xf32>
    %32 = tpu.reciprocal %31 : vector<8x1xf32> -> vector<8x1xf32>
    %33 = vector.broadcast %32 : vector<8x1xf32> to vector<8x128xf32>
    %34 = arith.mulf %29, %33 : vector<8x128xf32>
    %35 = arith.mulf %34, %18 : vector<8x128xf32>
    %c0_13 = arith.constant 0 : index
    %c0_14 = arith.constant 0 : index
    %36 = vector.load %arg8[%c0_13, %c0_14] : memref<1x128xf32, #tpu.memory_space<vmem>>, vector<1x128xf32>
    %cst_15 = arith.constant dense<0.000000e+00> : vector<128xf32>
    %37 = vector.multi_reduction <add>, %20, %cst_15 [0] : vector<8x128xf32> to vector<128xf32>
    %38 = vector.shape_cast %37 : vector<128xf32> to vector<1x128xf32>
    %39 = arith.addf %36, %38 : vector<1x128xf32>
    %c0_16 = arith.constant 0 : index
    %c0_17 = arith.constant 0 : index
    %40 = vector.load %arg8[%c0_16, %c0_17] : memref<1x128xf32, #tpu.memory_space<vmem>>, vector<1x128xf32>
    tpu.vector_store %arg8[%c0_16, %c0_17], %39 {strides = array<i32>} : memref<1x128xf32, #tpu.memory_space<vmem>>, vector<1x128xf32>,
    %c1 = arith.constant 1 : index
    %c0_18 = arith.constant 0 : index
    %c0_19 = arith.constant 0 : index
    %41 = vector.load %arg2[%c1, %c0_18, %c0_19] : memref<4x8x128xf32, #tpu.memory_space<vmem>>, vector<1x8x128xf32>
    %42 = vector.shape_cast %41 : vector<1x8x128xf32> to vector<8x128xf32>
    %cst_20 = arith.constant 1.000000e+01 : f32
    %43 = vector.broadcast %cst_20 : f32 to vector<8x128xf32>
    %44 = arith.mulf %42, %43 : vector<8x128xf32>
    %cst_21 = arith.constant dense<0xFF800000> : vector<8xf32>
    %45 = vector.multi_reduction <maximumf>, %44, %cst_21 [1] : vector<8x128xf32> to vector<8xf32>
    %46 = vector.shape_cast %45 : vector<8xf32> to vector<8x1xf32>
    %47 = vector.broadcast %46 : vector<8x1xf32> to vector<8x128xf32>
    %48 = arith.subf %44, %47 : vector<8x128xf32>
    %49 = math.exp %48 : vector<8x128xf32>
    %cst_22 = arith.constant dense<0.000000e+00> : vector<8xf32>
    %50 = vector.multi_reduction <add>, %49, %cst_22 [1] : vector<8x128xf32> to vector<8xf32>
    %51 = vector.shape_cast %50 : vector<8xf32> to vector<8x1xf32>
    %52 = math.log %51 : vector<8x1xf32>
    %53 = arith.addf %7, %44 : vector<8x128xf32>
    %54 = arith.addf %46, %52 : vector<8x1xf32>
    %55 = arith.addf %16, %54 : vector<8x1xf32>
    %56 = vector.broadcast %52 : vector<8x1xf32> to vector<8x128xf32>
    %57 = arith.subf %48, %56 : vector<8x128xf32>
    %c1_23 = arith.constant 1 : index
    %c0_24 = arith.constant 0 : index
    %c0_25 = arith.constant 0 : index
    %58 = vector.load %arg3[%c1_23, %c0_24, %c0_25] : memref<2x8x128xf32, #tpu.memory_space<vmem>>, vector<1x8x128xf32>
    %59 = vector.shape_cast %58 : vector<1x8x128xf32> to vector<8x128xf32>
    %60 = vector.broadcast %3 : vector<1x128xf32> to vector<8x128xf32>
    %61 = arith.subf %59, %60 : vector<8x128xf32>
    %cst_26 = arith.constant 2.500000e+01 : f32
    %62 = vector.broadcast %cst_26 : f32 to vector<8x128xf32>
    %63 = arith.mulf %61, %62 : vector<8x128xf32>
    %cst_27 = arith.constant dense<0xFF800000> : vector<8xf32>
    %64 = vector.multi_reduction <maximumf>, %63, %cst_27 [1] : vector<8x128xf32> to vector<8xf32>
    %65 = vector.shape_cast %64 : vector<8xf32> to vector<8x1xf32>
    %66 = vector.broadcast %65 : vector<8x1xf32> to vector<8x128xf32>
    %67 = arith.subf %63, %66 : vector<8x128xf32>
    %68 = math.exp %67 : vector<8x128xf32>
    %cst_28 = arith.constant dense<0.000000e+00> : vector<8xf32>
    %69 = vector.multi_reduction <add>, %68, %cst_28 [1] : vector<8x128xf32> to vector<8xf32>
    %70 = vector.shape_cast %69 : vector<8xf32> to vector<8x1xf32>
    %71 = tpu.reciprocal %70 : vector<8x1xf32> -> vector<8x1xf32>
    %72 = vector.broadcast %71 : vector<8x1xf32> to vector<8x128xf32>
    %73 = arith.mulf %68, %72 : vector<8x128xf32>
    %74 = arith.addf %34, %73 : vector<8x128xf32>
    %75 = arith.mulf %73, %57 : vector<8x128xf32>
    %76 = arith.addf %35, %75 : vector<8x128xf32>
    %c0_29 = arith.constant 0 : index
    %c0_30 = arith.constant 0 : index
    %77 = vector.load %arg8[%c0_29, %c0_30] : memref<1x128xf32, #tpu.memory_space<vmem>>, vector<1x128xf32>
    %cst_31 = arith.constant dense<0.000000e+00> : vector<128xf32>
    %78 = vector.multi_reduction <add>, %59, %cst_31 [0] : vector<8x128xf32> to vector<128xf32>
    %79 = vector.shape_cast %78 : vector<128xf32> to vector<1x128xf32>
    %80 = arith.addf %77, %79 : vector<1x128xf32>
    %c0_32 = arith.constant 0 : index
    %c0_33 = arith.constant 0 : index
    %81 = vector.load %arg8[%c0_32, %c0_33] : memref<1x128xf32, #tpu.memory_space<vmem>>, vector<1x128xf32>
    tpu.vector_store %arg8[%c0_32, %c0_33], %80 {strides = array<i32>} : memref<1x128xf32, #tpu.memory_space<vmem>>, vector<1x128xf32>,
    %c2 = arith.constant 2 : index
    %c0_34 = arith.constant 0 : index
    %c0_35 = arith.constant 0 : index
    %82 = vector.load %arg2[%c2, %c0_34, %c0_35] : memref<4x8x128xf32, #tpu.memory_space<vmem>>, vector<1x8x128xf32>
    %83 = vector.shape_cast %82 : vector<1x8x128xf32> to vector<8x128xf32>
    %cst_36 = arith.constant 1.000000e+01 : f32
    %84 = vector.broadcast %cst_36 : f32 to vector<8x128xf32>
    %85 = arith.mulf %83, %84 : vector<8x128xf32>
    %cst_37 = arith.constant dense<0xFF800000> : vector<8xf32>
    %86 = vector.multi_reduction <maximumf>, %85, %cst_37 [1] : vector<8x128xf32> to vector<8xf32>
    %87 = vector.shape_cast %86 : vector<8xf32> to vector<8x1xf32>
    %88 = vector.broadcast %87 : vector<8x1xf32> to vector<8x128xf32>
    %89 = arith.subf %85, %88 : vector<8x128xf32>
    %90 = math.exp %89 : vector<8x128xf32>
    %cst_38 = arith.constant dense<0.000000e+00> : vector<8xf32>
    %91 = vector.multi_reduction <add>, %90, %cst_38 [1] : vector<8x128xf32> to vector<8xf32>
    %92 = vector.shape_cast %91 : vector<8xf32> to vector<8x1xf32>
    %93 = math.log %92 : vector<8x1xf32>
    %94 = arith.addf %53, %85 : vector<8x128xf32>
    %95 = arith.addf %87, %93 : vector<8x1xf32>
    %96 = arith.addf %55, %95 : vector<8x1xf32>
    %c3 = arith.constant 3 : index
    %c0_39 = arith.constant 0 : index
    %c0_40 = arith.constant 0 : index
    %97 = vector.load %arg2[%c3, %c0_39, %c0_40] : memref<4x8x128xf32, #tpu.memory_space<vmem>>, vector<1x8x128xf32>
    %98 = vector.shape_cast %97 : vector<1x8x128xf32> to vector<8x128xf32>
    %cst_41 = arith.constant 1.000000e+01 : f32
    %99 = vector.broadcast %cst_41 : f32 to vector<8x128xf32>
    %100 = arith.mulf %98, %99 : vector<8x128xf32>
    %cst_42 = arith.constant dense<0xFF800000> : vector<8xf32>
    %101 = vector.multi_reduction <maximumf>, %100, %cst_42 [1] : vector<8x128xf32> to vector<8xf32>
    %102 = vector.shape_cast %101 : vector<8xf32> to vector<8x1xf32>
    %103 = vector.broadcast %102 : vector<8x1xf32> to vector<8x128xf32>
    %104 = arith.subf %100, %103 : vector<8x128xf32>
    %105 = math.exp %104 : vector<8x128xf32>
    %cst_43 = arith.constant dense<0.000000e+00> : vector<8xf32>
    %106 = vector.multi_reduction <add>, %105, %cst_43 [1] : vector<8x128xf32> to vector<8xf32>
    %107 = vector.shape_cast %106 : vector<8xf32> to vector<8x1xf32>
    %108 = math.log %107 : vector<8x1xf32>
    %109 = arith.addf %94, %100 : vector<8x128xf32>
    %110 = arith.addf %102, %108 : vector<8x1xf32>
    %111 = arith.addf %96, %110 : vector<8x1xf32>
    %112 = vector.broadcast %111 : vector<8x1xf32> to vector<8x128xf32>
    %113 = arith.subf %109, %112 : vector<8x128xf32>
    %c0_44 = arith.constant 0 : index
    %c0_45 = arith.constant 0 : index
    %114 = vector.load %arg7[%c0_44, %c0_45] : memref<1x128xf32, #tpu.memory_space<vmem>>, vector<1x128xf32>
    %115 = arith.mulf %74, %113 : vector<8x128xf32>
    %116 = arith.subf %115, %76 : vector<8x128xf32>
    %cst_46 = arith.constant dense<0.000000e+00> : vector<128xf32>
    %117 = vector.multi_reduction <add>, %116, %cst_46 [0] : vector<8x128xf32> to vector<128xf32>
    %118 = vector.shape_cast %117 : vector<128xf32> to vector<1x128xf32>
    %119 = arith.addf %114, %118 : vector<1x128xf32>
    %c0_47 = arith.constant 0 : index
    %c0_48 = arith.constant 0 : index
    %120 = vector.load %arg7[%c0_47, %c0_48] : memref<1x128xf32, #tpu.memory_space<vmem>>, vector<1x128xf32>
    tpu.vector_store %arg7[%c0_47, %c0_48], %119 {strides = array<i32>} : memref<1x128xf32, #tpu.memory_space<vmem>>, vector<1x128xf32>,
    %c1_i32 = arith.constant 1 : i32
    %121 = arith.cmpi eq, %arg1, %c1_i32 : i32
    %122 = arith.extui %121 : i1 to i32
    %c0_i32_49 = arith.constant 0 : i32
    %123 = arith.cmpi ne, %122, %c0_i32_49 : i32
    scf.if %123 {
      %c0_50 = arith.constant 0 : index
      %c0_51 = arith.constant 0 : index
      %124 = vector.load %arg7[%c0_50, %c0_51] : memref<1x128xf32, #tpu.memory_space<vmem>>, vector<1x128xf32>
      %c0_52 = arith.constant 0 : index
      %c0_53 = arith.constant 0 : index
      %c0_54 = arith.constant 0 : index
      %125 = vector.load %arg5[%c0_52, %c0_53, %c0_54] : memref<1x1x128xf32, #tpu.memory_space<vmem>>, vector<1x1x128xf32>
      %126 = vector.shape_cast %125 : vector<1x1x128xf32> to vector<1x128xf32>
      %127 = vector.shape_cast %124 : vector<1x128xf32> to vector<1x1x128xf32>
      tpu.vector_store %arg5[%c0_52, %c0_53, %c0_54], %127 {strides = array<i32>} : memref<1x1x128xf32, #tpu.memory_space<vmem>>, vector<1x1x128xf32>,
      %c0_55 = arith.constant 0 : index
      %c0_56 = arith.constant 0 : index
      %128 = vector.load %arg8[%c0_55, %c0_56] : memref<1x128xf32, #tpu.memory_space<vmem>>, vector<1x128xf32>
      %c0_57 = arith.constant 0 : index
      %c0_58 = arith.constant 0 : index
      %c0_59 = arith.constant 0 : index
      %129 = vector.load %arg6[%c0_57, %c0_58, %c0_59] : memref<1x1x128xf32, #tpu.memory_space<vmem>>, vector<1x1x128xf32>
      %130 = vector.shape_cast %129 : vector<1x1x128xf32> to vector<1x128xf32>
      %131 = vector.shape_cast %128 : vector<1x128xf32> to vector<1x1x128xf32>
      tpu.vector_store %arg6[%c0_57, %c0_58, %c0_59], %131 {strides = array<i32>} : memref<1x1x128xf32, #tpu.memory_space<vmem>>, vector<1x1x128xf32>,
    } else {
    }
    return
  }
  func.func @transform_0(%arg0: i32, %arg1: i32) -> (i32, i32, i32) {
    %c2_i32 = arith.constant 2 : i32
    %0 = arith.muli %arg0, %c2_i32 : i32
    %1 = arith.addi %0, %arg1 : i32
    %c0_i32 = arith.constant 0 : i32
    %c0_i32_0 = arith.constant 0 : i32
    %c0_i32_1 = arith.constant 0 : i32
    return %c0_i32, %1, %c0_i32_0 : i32, i32, i32
  }
  func.func @transform_1(%arg0: i32, %arg1: i32) -> (i32, i32, i32) {
    %c2_i32 = arith.constant 2 : i32
    %0 = arith.muli %arg0, %c2_i32 : i32
    %1 = arith.addi %0, %arg1 : i32
    %c0_i32 = arith.constant 0 : i32
    %c0_i32_0 = arith.constant 0 : i32
    %c0_i32_1 = arith.constant 0 : i32
    return %c0_i32, %1, %c0_i32_0 : i32, i32, i32
  }
  func.func @transform_2(%arg0: i32, %arg1: i32) -> (i32, i32) {
    %c0_i32 = arith.constant 0 : i32
    %c0_i32_0 = arith.constant 0 : i32
    %c0_i32_1 = arith.constant 0 : i32
    return %c0_i32, %c0_i32_0 : i32, i32
  }
  func.func @transform_3(%arg0: i32, %arg1: i32) -> (i32, i32, i32) {
    %c0_i32 = arith.constant 0 : i32
    %c0_i32_0 = arith.constant 0 : i32
    %c0_i32_1 = arith.constant 0 : i32
    return %arg0, %c0_i32, %c0_i32_0 : i32, i32, i32
  }
  func.func @transform_4(%arg0: i32, %arg1: i32) -> (i32, i32, i32) {
    %c0_i32 = arith.constant 0 : i32
    %c0_i32_0 = arith.constant 0 : i32
    %c0_i32_1 = arith.constant 0 : i32
    return %arg0, %c0_i32, %c0_i32_0 : i32, i32, i32
  }
}

</mosaic_0001>

<bundles_post_ra>
// kernel: tpu_custom_call.1
= control target key start
LH: loop header
LB: loop body
LE: loop exit
PB: predicated region body
PF: predicated region fallthrough
CT: control target
= control target key end

     0   :  { %10 = vsyncpa [#allocation5], 0  ;;  %s1146_s0 = inlined_call_operand.hbm [shape: f32[4,16,128], index: 0, kind: input, shape index: {}]   ;;  %s1147_s1 = inlined_call_operand.hbm [shape: f32[2,16,128], index: 1, kind: input, shape index: {}]   ;;  %s1148_s2 = inlined_call_operand.vmem [shape: f32[1,128], index: 2, kind: input, shape index: {}]   ;;  %s1149_s3 = inlined_call_operand.hbm [shape: f32[1,1,128], index: 3, kind: output, shape index: {0}]   ;;  %s1150_s4 = inlined_call_operand.hbm [shape: f32[1,1,128], index: 4, kind: output, shape index: {1}]  }
   0x1   :  { %12 = vsyncpa [#allocation5 + $0x1], 0 }
   0x2   :  { %13 = vsyncpa [#allocation8], 0 }
   0x3   :  { %15 = vsyncpa [#allocation8 + $0x1], 0 }
   0x4   :  { %16 = vsyncpa [#allocation6], 0 }
   0x5   :  { %17 = vsyncpa [#allocation11], 0  ;;  %s875_s15 = smov 0   ;;  %s877_s16 = smov 0  }
   0x6   :  { %s879_s17 = smov 0   ;;  %s881_s18 = smov 0  }
   0x7   :  { %s883_s19 = smov 0   ;;  %s885_s20 = smov 0  }
   0x8 LB: > { %s541_s21 = sadd.s32 4294967295, %s840_s20   ;;  %s32_s22 = sadd.s32 1, %s836_s19  ;;  %s840_s20 = sphi %s885_s20, %s23_s20   ;;  %s836_s19 = sphi %s883_s19, %s1163_s19   ;;  %s832_s18 = sphi %s881_s18, %s1162_s18   ;;  %s828_s17 = sphi %s879_s17, %s1161_s17   ;;  %s824_s16 = sphi %s877_s16, %s1160_s16   ;;  %s820_s15 = sphi %s875_s15, %s1159_s15  }
   0x9   : > { %p33_p0 = scmp.ge.s32.totalorder %s32_s22, 2  ;;  %s46_s23 = sadd.s32 1, %s828_s17 }
   0xa   : > { %p53_p1 = scmp.ne.s32.totalorder %s828_s17, %s824_s16  ;;  %p54_p2 = scmp.eq.s32.totalorder %s840_s20, 0 }
   0xb   : > { %s1165_s22 = smov (%p33_p0, %s32_s22), 0  ;;  %p59_p4 = scmp.ne.s32.totalorder %s824_s16, %s820_s15 }
   0xc   : > { %p911_p3 = por %p54_p2, %p53_p1  ;;  %s43_s25 = ssub.s32 %s836_s19, %s1165_s22 }
   0xd   : > { %p60_p5 = scmp.eq.s32.totalorder %s541_s21, 0  ;;  %p44_p6 = scmp.eq.s32.totalorder %s43_s25, 0 }
   0xe   : > { %p583_p8 = scmp.lt.s32.totalorder %s840_s20, 2  ;;  %s929_s28 = sand.u32 1, %s828_s17  }
   0xf   : > { %p920_p7 = por %p60_p5, %p59_p4  ;;  %s545_s29 = sshll.u32 %s836_s19, 7 }
  0x10   : > { %s926_s27 = scalar_select %p44_p6, %s828_s17, %s46_s23  }
  0x11   : > { %s1153_s26 = scalar_select %p920_p7, 1, 0 }
  0x12   : > { %s544_s30 = sshll.u32 %s929_s28, 5  ;;  %s938_s7 = scalar_lea.hbm %s1146_s0, %s545_s29 }
  0x13   : > { %s193_s8 = scalar_lea.vmem [#allocation4], %s544_s30  ;;  %p942_p9 = pnand %p583_p8, %p911_p3 }
  0x14   : > { %s201_s9 = sshll.u32 %s193_s8, 4  ;;  %s190_s11 = scalar_lea.sflag [#allocation5], %s929_s28  ;;  %s946_s9 = int_to_ptr.vmem [resolvable:$true] %s201_s9 }
  0x15   : > { %s666_s12 = scalar_lea.hbm %s938_s7, 512  ;;  %p668_p12 = pneg %p942_p9 }
  0x16   : > { %p667_p11 = scmp.ne.s32.totalorder %s938_s7, %s666_s12  ;;  %s671_s15 = scalar_lea.hbm %s1146_s0, 1024 }
  0x17   : > { %p672_p1 = scmp.lt.u32.totalorder %s938_s7, %s1146_s0  ;;  %p673_p2 = scmp.lt.u32.totalorder %s671_s15, %s666_s12 }
  0x18   : > { %p669_p13 = pnand %p668_p12, %p667_p11  ;;  %p675_p4 = scmp.lt.u32.totalorder %s666_s12, %s938_s7 }
  0x19   : > { %p674_p3 = por %p673_p2, %p672_p1 }
  0x1a   : > { %p670_p0 = pneg %p669_p13 }
  0x1b   : > { %p676_p5 = por %p675_p4, %p674_p3 }
  0x1d   : > { %p677_p6 = pnand %p676_p5, %p670_p0 }
  0x1f   : > { %680 = shalt.err (!%p677_p6)
}
  0x20   : > { %s681_s25 = scalar_lea.vmem %s946_s9, 512  ;;  %s842_s30 = smov [#allocation4]  }
  0x21   : > { %p682_p8 = scmp.ne.s32.totalorder %s946_s9, %s681_s25  ;;  %s686_s5 = sshll.u32 %s842_s30, 4  ;;  %s687_s5 = int_to_ptr.vmem [resolvable:$false] %s686_s5 }
  0x22   : > { %s688_s6 = scalar_lea.vmem %s687_s5, 1024  ;;  %p689_p10 = scmp.lt.s32.totalorder %s946_s9, %s687_s5 }
  0x23   : > { %p684_p11 = pnand %p682_p8, %p668_p12  ;;  %p690_p1 = scmp.lt.s32.totalorder %s688_s6, %s681_s25 }
  0x25   : > { %p685_p13 = pneg %p684_p11  ;;  %p691_p2 = por %p690_p1, %p689_p10 }
  0x27   : > { %p692_p3 = pnand %p691_p2, %p685_p13 }
  0x29   : > { %695 = shalt.err (!%p692_p3)
}
  0x2a   : > { %s843_s8 = smov 256   ;;  %s844_s12 = smov 128  }
  0x2b   : > { %s845_s13 = smov 8   ;;  %p231_p10 = scmp.lt.s32.totalorder %s840_s20, 3 }
  0x2c   : > { %579 = dma.hbm_to_vmem [thread:$0]  (!%p942_p9), %s938_s7, 512, %s946_s9, %s190_s11, %s843_s8, %s844_s12, %s845_s13  }
  0x2d   : > { %s546_s14 = sshll.u32 %s929_s28, 4  ;;  %s987_s24 = scalar_lea.hbm %s1147_s1, %s545_s29 }
  0x2e   : > { %p1155_p0 = scmp.ge.s32.totalorder %s840_s20, 1  ;;  %s215_s30 = scalar_lea.vmem [#allocation7], %s546_s14 }
  0x2f   : > { %s223_s5 = sshll.u32 %s215_s30, 4  ;;  %s212_s7 = scalar_lea.sflag [#allocation8], %s929_s28  ;;  %s995_s5 = int_to_ptr.vmem [resolvable:$true] %s223_s5 }
  0x30   : > { %p991_p4 = pnand %p1155_p0, %p231_p10  ;;  %s696_s9 = scalar_lea.hbm %s987_s24, 256 }
  0x31   : > { %p697_p5 = scmp.ne.s32.totalorder %s987_s24, %s696_s9  ;;  %s701_s6 = scalar_lea.hbm %s1147_s1, 512 }
  0x32   : > { %p702_p11 = scmp.lt.u32.totalorder %s987_s24, %s1147_s1  ;;  %p703_p13 = scmp.lt.u32.totalorder %s701_s6, %s696_s9 }
  0x33   : > { %p699_p6 = pnand %p697_p5, %p668_p12  ;;  %p705_p2 = scmp.lt.u32.totalorder %s696_s9, %s987_s24 }
  0x34   : > { %p704_p1 = por %p703_p13, %p702_p11 }
  0x35   : > { %p700_p8 = pneg %p699_p6 }
  0x36   : > { %p706_p3 = por %p705_p2, %p704_p1 }
  0x38   : > { %p707_p10 = pnand %p706_p3, %p700_p8 }
  0x3a   : > { %710 = shalt.err (!%p707_p10)
}
  0x3b   : > { %s711_s14 = scalar_lea.vmem %s995_s5, 256  ;;  %s846_s30 = smov [#allocation7]  }
  0x3c   : > { %p712_p0 = scmp.ne.s32.totalorder %s995_s5, %s711_s14  ;;  %s716_s29 = sshll.u32 %s846_s30, 4  ;;  %s717_s29 = int_to_ptr.vmem [resolvable:$false] %s716_s29 }
  0x3d   : > { %s718_s11 = scalar_lea.vmem %s717_s29, 512  ;;  %p719_p7 = scmp.lt.s32.totalorder %s995_s5, %s717_s29 }
  0x3e   : > { %p714_p5 = pnand %p712_p0, %p668_p12  ;;  %p720_p11 = scmp.lt.s32.totalorder %s718_s11, %s711_s14 }
  0x40   : > { %p715_p6 = pneg %p714_p5  ;;  %p721_p13 = por %p720_p11, %p719_p7 }
  0x42   : > { %p722_p1 = pnand %p721_p13, %p715_p6 }
  0x44   : > { %725 = shalt.err (!%p722_p1)
}
  0x45   : > { %582 = dma.hbm_to_vmem [thread:$0]  (!%p942_p9), %s987_s24, 256, %s995_s5, %s212_s7, %s843_s8, %s844_s12, %s845_s13  }
  0x46   : > { %235 = sbr.rel (%p991_p4) target bundleno = 494 (0x1ee), region = 32  ;;  %s237_s9 = sand.u32 (!%p991_p4), 1, %s824_s16  }
  0x47   : > { %s549_s6 = sshll.u32 (!%p991_p4), %s237_s9, 5  ;;  %s238_s15 = scalar_lea.sflag (!%p991_p4), [#allocation5], %s237_s9 }
  0x48   : > { %s241_s23 = scalar_lea.vmem (!%p991_p4), [#allocation4], %s549_s6  ;;  %p1157_p7 = scmp.ne.s32.totalorder (!%p991_p4), %s1153_s26, 0 }
  0x4d   : > { %803 = dma.done.wait (%p1157_p7), %s238_s15, 512  }
  0x4e   : > { %805 = vsyncadd (%p1157_p7), %s238_s15, 4294966784  ;;  %s550_s10 = sshll.u32 %s237_s9, 4  ;;  %s247_s28 = scalar_lea.sflag [#allocation8], %s237_s9 }
  0x4f   : > { %s250_s14 = scalar_lea.vmem [#allocation7], %s550_s10 }
  0x50   : > { %807 = dma.done.wait (%p1157_p7), %s247_s28, 256  }
  0x51   : > { %809 = vsyncadd (%p1157_p7), %s247_s28, 4294967040  ;;  %p551_p9 = scmp.ne.s32.totalorder %s832_s18, 0 }
  0x52   : > { %v847_v0 = vmov (!%p551_p9), 0.0  }
  0x53   : > { %282 = sbr.rel (%p551_p9) target bundleno = 90 (0x5a), region = 44  ;;  %283 = vst [vmem:[#allocation2] sm:$0x1] (!%p551_p9), %v847_v0  ;;  %284 = vst [vmem:[#allocation3] sm:$0x1] (!%p551_p9), %v847_v0 }
  0x5a PF: > { %v286_v1 = vld [vmem:[%s241_s23] sm:$0xff]  ;;  %v555_v2 = vld [vmem:[%s241_s23 + $0x10] sm:$0xff]  ;;  %v553_v3 = vld [vmem:[%s241_s23 + $0x8] sm:$0xff]  ;;  %p557_p12 = scmp.ne.s32.totalorder %s832_s18, 1 }
  0x5b   : > { %v1038_v4 = vmul.f32 10.0, %v286_v1  ;;  %v1040_v5 = vmul.f32 10.0, %v555_v2  ;;  %v556_v6 = vld [vmem:[%s241_s23 + $0x18] sm:$0xff]  ;;  %v1045_v8 = vmul.f32 10.0, %v553_v3  ;;  %v299_v9 = vld [vmem:[%s250_s14] sm:$0xff] }
  0x5c   : > { %v552_v7 = vld [vmem:[%s1148_s2] ss:$0 sm:$0xff]  ;;  %v1049_v11 = vmul.f32 10.0, %v556_v6  ;;  %v319_v13 = vrot.slane %v299_v9, 4  ;;  %v318_v24 = vld [vmem:[#allocation3] sm:$0x1] }
  0x5d   : > { %v554_v10 = vld [vmem:[%s250_s14 + $0x8] sm:$0xff]  ;;  %288 = vmax.xlane.f32.xlu0 %v1038_v4  ;;  %371 = vmax.xlane.f32.xlu1 %v1040_v5  ;;  %v306_v12 = vsub.f32 %v299_v9, %v552_v7  ;;  %v339_v63 = vadd.f32 %v1045_v8, %v1038_v4 }
  0x5e   : > { %v345_v14 = vsub.f32 %v554_v10, %v552_v7  ;;  %v360_v15 = vrot.slane %v554_v10, 4  ;;  %v320_v16 = vadd.f32 %v319_v13, %v299_v9 }
  0x5f   : > { %v307_v18 = vmul.f32 25.0, %v306_v12  ;;  %v380_v7 = vadd.f32 %v1040_v5, %v339_v63 }
  0x60   : > { %v361_v17 = vadd.f32 %v554_v10, %v360_v15  ;;  %v321_v19 = vrot.slane %v320_v16, 2  ;;  %v346_v20 = vmul.f32 25.0, %v345_v14 }
  0x61   : > { %330 = vmax.xlane.f32.xlu0 %v1045_v8  ;;  %386 = vmax.xlane.f32.xlu1 %v1049_v11 }
  0x62   : > { %v322_v21 = vadd.f32 %v321_v19, %v320_v16  ;;  %v362_v22 = vrot.slane %v361_v17, 2 }
  0x64   : > { %v323_v23 = vrot.slane %v322_v21, 1  ;;  %v363_v26 = vadd.f32 %v362_v22, %v361_v17  ;;  %v395_v17 = vadd.f32 %v1049_v11, %v380_v7 }
  0x65   : > { %308 = vmax.xlane.f32.xlu0 %v307_v18  ;;  %347 = vmax.xlane.f32.xlu1 %v346_v20 }
  0x66   : > { %v324_v25 = vadd.f32 %v323_v23, %v322_v21  ;;  %v364_v28 = vrot.slane %v363_v26, 1 }
  0x68   : > { %v325_v27 = vadd.f32 %v324_v25, %v318_v24  ;;  %v365_v29 = vadd.f32 %v364_v28, %v363_v26 }
  0x6a   : > { %326 = vst [vmem:[#allocation3] sm:$0x1] %v325_v27 }
  0x71   : > { %v359_v30 = vld [vmem:[#allocation3] sm:$0x1] }
  0x72   : > { %v366_v31 = vadd.f32 %v365_v29, %v359_v30 }
  0x74   : > { %367 = vst [vmem:[#allocation3] sm:$0x1] %v366_v31 }
  0xea   : > { %v289_v32 = vpop.xlane.xlu0 %288  ;;  %v372_v33 = vpop.xlane.xlu1 %371 }
  0xeb   : > { %v1054_v34 = vsub.f32 %v1038_v4, %v289_v32  ;;  %v373_v35 = vsub.f32 %v1040_v5, %v372_v33 }
  0xed   : > { %v291_v36 = vmul.f32 1.442695, %v1054_v34  ;;  %v374_v37 = vmul.f32 1.442695, %v373_v35  ;;  %v399_v35 = vld [vmem:[#allocation2] sm:$0x1] }
  0xee   : > { %v331_v38 = vpop.xlane.xlu0 %330  ;;  %v387_v39 = vpop.xlane.xlu1 %386 }
  0xef   : > { %642 = vpow2.f32 %v291_v36  ;;  %v1059_v40 = vsub.f32 %v1045_v8, %v331_v38  ;;  %v388_v41 = vsub.f32 %v1049_v11, %v387_v39 }
  0xf0   : > { %644 = vpow2.f32 %v374_v37 }
  0xf1   : > { %v333_v42 = vmul.f32 1.442695, %v1059_v40  ;;  %v389_v43 = vmul.f32 1.442695, %v388_v41 }
  0xf2   : > { %v309_v44 = vpop.xlane.xlu0 %308  ;;  %v348_v45 = vpop.xlane.xlu1 %347 }
  0xf3   : > { %646 = vpow2.f32 %v333_v42  ;;  %v310_v46 = vsub.f32 %v307_v18, %v309_v44  ;;  %v349_v47 = vsub.f32 %v346_v20, %v348_v45 }
  0xf4   : > { %648 = vpow2.f32 %v389_v43 }
  0xf5   : > { %v311_v48 = vmul.f32 1.442695, %v310_v46  ;;  %v350_v49 = vmul.f32 1.442695, %v349_v47 }
  0xf7   : > { %650 = vpow2.f32 %v311_v48 }
  0xf8   : > { %652 = vpow2.f32 %v350_v49 }
  0xf9   : > { %v643_v50 = vpop.eup %642 }
  0xfa   : > { %293 = vadd.xlane.f32.xlu0 %v643_v50  ;;  %v645_v51 = vpop.eup %644 }
  0xfd   : > { %v647_v52 = vpop.eup %646 }
  0xfe   : > { %335 = vadd.xlane.f32.xlu1 %v647_v52  ;;  %376 = vadd.xlane.f32.xlu0 %v645_v51  ;;  %v649_v53 = vpop.eup %648 }
 0x101   : > { %v651_v54 = vpop.eup %650 }
 0x102   : > { %391 = vadd.xlane.f32.xlu1 %v649_v53  ;;  %313 = vadd.xlane.f32.xlu0 %v651_v54  ;;  %v653_v55 = vpop.eup %652 }
 0x106   : > { %352 = vadd.xlane.f32.xlu1 %v653_v55 }
 0x187   : > { %v294_v56 = vpop.xlane.xlu0 %293 }
 0x188   : > { %654 = vlog2.f32 %v294_v56 }
 0x18b   : > { %v336_v57 = vpop.xlane.xlu1 %335  ;;  %v377_v58 = vpop.xlane.xlu0 %376 }
 0x18c   : > { %656 = vlog2.f32 %v336_v57 }
 0x18d   : > { %658 = vlog2.f32 %v377_v58 }
 0x18f   : > { %v392_v59 = vpop.xlane.xlu1 %391  ;;  %v314_v60 = vpop.xlane.xlu0 %313 }
 0x190   : > { %660 = vlog2.f32 %v392_v59 }
 0x191   : > { %662 = vrcp.f32 %v314_v60 }
 0x192   : > { %v655_v61 = vpop.eup %654 }
 0x193   : > { %v353_v62 = vpop.xlane.xlu1 %352  ;;  %v296_v0 = vmul.f32 0.6931472, %v655_v61 }
 0x194   : > { %664 = vrcp.f32 %v353_v62 }
 0x195   : > { %v297_v9 = vadd.f32 %v296_v0, %v289_v32  ;;  %v298_v8 = vsub.f32 %v1054_v34, %v296_v0 }
 0x196   : > { %v657_v1 = vpop.eup %656 }
 0x197   : > { %v659_v2 = vpop.eup %658  ;;  %v338_v3 = vmul.f32 0.6931472, %v657_v1 }
 0x198   : > { %v379_v6 = vmul.f32 0.6931472, %v659_v2 }
 0x199   : > { %v340_v10 = vadd.f32 %v338_v3, %v331_v38  ;;  %v342_v21 = vsub.f32 %v1059_v40, %v338_v3  ;;  %v416_v38 = vld [vmem:[#allocation3] sm:$0x1] (!%p557_p12) }
 0x19a   : > { %v661_v12 = vpop.eup %660  ;;  %v381_v15 = vadd.f32 %v379_v6, %v372_v33  ;;  %417 = vst [vmem:[#allocation10] sm:$0x1] (!%p557_p12), %v416_v38 }
 0x19b   : > { %v663_v13 = vpop.eup %662  ;;  %v341_v14 = vadd.f32 %v340_v10, %v297_v9  ;;  %v394_v16 = vmul.f32 0.6931472, %v661_v12 }
 0x19c   : > { %v316_v20 = vmul.f32 %v663_v13, %v651_v54 }
 0x19d   : > { %v382_v18 = vadd.f32 %v381_v15, %v341_v14  ;;  %v396_v19 = vadd.f32 %v394_v16, %v387_v39 }
 0x19e   : > { %v665_v4 = vpop.eup %664  ;;  %v317_v24 = vmul.f32 %v316_v20, %v298_v8 }
 0x19f   : > { %v397_v22 = vadd.f32 %v396_v19, %v382_v18  ;;  %v355_v23 = vmul.f32 %v665_v4, %v653_v55 }
 0x1a1   : > { %v398_v5 = vsub.f32 %v395_v17, %v397_v22  ;;  %v356_v25 = vadd.f32 %v355_v23, %v316_v20  ;;  %v357_v26 = vmul.f32 %v355_v23, %v342_v21 }
 0x1a3   : > { %v358_v27 = vadd.f32 %v357_v26, %v317_v24  ;;  %v400_v28 = vmul.f32 %v398_v5, %v356_v25 }
 0x1a5   : > { %v401_v29 = vsub.f32 %v400_v28, %v358_v27 }
 0x1a7   : > { %v402_v30 = vrot.slane %v401_v29, 4 }
 0x1a9   : > { %v403_v31 = vadd.f32 %v402_v30, %v401_v29 }
 0x1ab   : > { %v404_v11 = vrot.slane %v403_v31, 2 }
 0x1ad   : > { %v405_v32 = vadd.f32 %v404_v11, %v403_v31 }
 0x1af   : > { %v406_v33 = vrot.slane %v405_v32, 1  ;;  %413 = sbr.rel (%p557_p12) target bundleno = 446 (0x1be), region = 48 }
 0x1b1   : > { %v407_v36 = vadd.f32 %v406_v33, %v405_v32 }
 0x1b3   : > { %v408_v37 = vadd.f32 %v407_v36, %v399_v35 }
 0x1b5   : > { %409 = vst [vmem:[#allocation2] sm:$0x1] %v408_v37 }
 0x1bc   : > { %v414_v34 = vld [vmem:[#allocation2] sm:$0x1] }
 0x1bd   : > { %415 = vst [vmem:[#allocation9] sm:$0x1] %v414_v34 }
 0x1be PF: > { %p1072_p4 = scmp.eq.s32.totalorder %s541_s21, 1  ;;  %s848_s13 = smov [#allocation9]  }
 0x1bf   : > { %s427_s24 = sshll.u32 %s848_s13, 4  ;;  %s849_s25 = smov [#allocation10]   ;;  %s428_s24 = int_to_ptr.vmem [resolvable:$true] %s427_s24 }
 0x1c0   : > { %s440_s5 = sshll.u32 %s849_s25, 4  ;;  %s726_s18 = scalar_lea.vmem %s428_s24, 16  ;;  %s1076_s5 = int_to_ptr.vmem [resolvable:$true] %s440_s5 }
 0x1c1   : > { %p727_p8 = scmp.ne.s32.totalorder %s428_s24, %s726_s18  ;;  %s732_s7 = scalar_lea.vmem %s428_s24, 32 }
 0x1c2   : > { %p733_p10 = scmp.lt.s32.totalorder %s428_s24, %s428_s24  ;;  %p734_p0 = scmp.lt.s32.totalorder %s732_s7, %s726_s18 }
 0x1c3   : > { %p728_p2 = pnand %p727_p8, %p1072_p4 }
 0x1c4   : > { %p735_p5 = por %p734_p0, %p733_p10 }
 0x1c5   : > { %p729_p3 = pneg %p728_p2 }
 0x1c7   : > { %p736_p6 = pnand %p735_p5, %p729_p3 }
 0x1c9   : > { %739 = shalt.err (!%p736_p6)
}
 0x1ca   : > { %s740_s29 = scalar_lea.hbm %s1149_s3, 16 }
 0x1cb   : > { %p741_p11 = scmp.ne.s32.totalorder %s1149_s3, %s740_s29  ;;  %p746_p7 = scmp.lt.u32.totalorder %s740_s29, %s1149_s3 }
 0x1cd   : > { %p742_p13 = pnand %p741_p11, %p1072_p4 }
 0x1cf   : > { %p743_p1 = pneg %p742_p13 }
 0x1d1   : > { %p748_p9 = pnand %p746_p7, %p743_p1 }
 0x1d3   : > { %751 = shalt.err (!%p748_p9)
}
 0x1d4   : > { %569 = dma.vmem_to_hbm [thread:$0]  (%p1072_p4), %s428_s24, 16, %s1149_s3, [#allocation6]  }
 0x1d5   : > { %s752_s28 = scalar_lea.vmem %s1076_s5, 16  ;;  %s758_s14 = scalar_lea.vmem %s1076_s5, 32 }
 0x1d6   : > { %p753_p12 = scmp.ne.s32.totalorder %s1076_s5, %s752_s28  ;;  %p759_p3 = scmp.lt.s32.totalorder %s1076_s5, %s1076_s5 }
 0x1d7   : > { %p760_p10 = scmp.lt.s32.totalorder %s758_s14, %s752_s28 }
 0x1d8   : > { %p754_p8 = pnand %p753_p12, %p1072_p4 }
 0x1d9   : > { %p761_p0 = por %p760_p10, %p759_p3 }
 0x1da   : > { %p755_p2 = pneg %p754_p8 }
 0x1dc   : > { %p762_p5 = pnand %p761_p0, %p755_p2 }
 0x1de   : > { %765 = shalt.err (!%p762_p5)
}
 0x1df   : > { %s766_s13 = scalar_lea.hbm %s1150_s4, 16 }
 0x1e0   : > { %p767_p6 = scmp.ne.s32.totalorder %s1150_s4, %s766_s13  ;;  %p772_p1 = scmp.lt.u32.totalorder %s766_s13, %s1150_s4 }
 0x1e2   : > { %p768_p11 = pnand %p767_p6, %p1072_p4 }
 0x1e4   : > { %p769_p13 = pneg %p768_p11 }
 0x1e6   : > { %p774_p7 = pnand %p772_p1, %p769_p13 }
 0x1e8   : > { %777 = shalt.err (!%p774_p7)
}
 0x1e9   : > { %571 = dma.vmem_to_hbm [thread:$0]  (%p1072_p4), %s1076_s5, 16, %s1150_s4, [#allocation11]  }
 0x1ea   : > { %811 = dma.done.wait (%p1072_p4), [#allocation6], 16  }
 0x1eb   : > { %813 = vsyncadd (%p1072_p4), [#allocation6], 4294967280 }
 0x1ec   : > { %815 = dma.done.wait (%p1072_p4), [#allocation11], 16  }
 0x1ed   : > { %817 = vsyncadd (%p1072_p4), [#allocation11], 4294967280 }
 0x1ee PF: > { %s23_s20 = sadd.s32 1, %s840_s20   ;;  %s1159_s15 = smov %s824_s16 }
 0x1ef   : > { %p20_p9 = scmp.ge.s32.totalorder %s23_s20, 4   ;;  %s1160_s16 = smov %s828_s17 }
 0x1f0   : > { %s1161_s17 = smov %s926_s27  ;;  %s1162_s18 = smov %s836_s19 }
 0x1f1   : > { %s1163_s19 = smov %s1165_s22  ;;  %22 = sbr.rel (!%p20_p9) target bundleno = 8 (0x8), region = 104 }
 0x1f8   :  { %457 = vsyncpa [#allocation5], 1 }
 0x1f9   :  { %459 = vsyncpa [#allocation5 + $0x1], 1 }
 0x1fa   :  { %460 = vsyncpa [#allocation8], 1 }
 0x1fb   :  { %462 = vsyncpa [#allocation8 + $0x1], 1 }
 0x1fc   :  { %463 = vsyncpa [#allocation6], 1 }
 0x1fd   :  { %465 = vsyncpa [#allocation6 + $0x1], 1 }
 0x1fe   :  { %466 = vsyncpa [#allocation11], 1 }

</bundles_post_ra>
